<compile_context>
chip_gen: v7x
topology: tpu7x:2x2x1
jax: 0.10.0
libtpu: 0.0.40
codegen_flags: <defaults>
</compile_context>

<pallas_src>
import jax
import jax.numpy as jnp
from jax.experimental import pallas as pl
from jax.experimental.pallas import tpu as pltpu


def mlp_kernel(xT_ref, w1_ref, b1_ref, w2_ref, b2_ref, o_ref):
    # xT        : (1, TB)     batch tile on lanes (lane-dense)
    # w1, b1, w2: (H_pad, 1)  hidden on sublanes (zero-padded rows are inert)
    # b2        : (1,) scalar in SMEM
    xT = xT_ref[...]                                                  # (1, TB)

    # First layer: K=1 "matmul" == outer product -> VPU broadcast multiply-add, then ReLU.
    h = jnp.maximum(w1_ref[...] * xT + b1_ref[...], 0.0)             # (H_pad, TB)

    # Output layer: N=1 "matmul" == per-column dot -> VPU multiply + XLU sublane reduction.
    z = jnp.sum(h * w2_ref[...], axis=0, keepdims=True) + b2_ref[0]  # (1, TB)

    # sigmoid lowers to the EUP; *2 is a VPU op.  Lane-dense unmasked store.
    o_ref[...] = (jax.nn.sigmoid(z) * 2.0).astype(o_ref.dtype)


def mlp_forward(x, w1, b1, w2, b2):
    B, in_size = x.shape
    assert in_size == 1, "MLP spec has in_size=1 (first layer is an outer product)"
    H = w1.shape[1]
    H_pad = pl.cdiv(H, 128) * 128

    # Batch lane tile: one full tile for small B, 512 lanes/step for big B (pipelined, parallel).
    TB = 512 if B > 512 else pl.cdiv(B, 128) * 128
    B_pad = pl.cdiv(B, TB) * TB
    nb = B_pad // TB

    # Host-side layout prep: transpose to batch-on-lanes, zero-pad hidden and batch.
    xT = jnp.zeros((1, B_pad), jnp.float32).at[0, :B].set(x[:, 0].astype(jnp.float32))
    w1c = jnp.zeros((H_pad, 1), jnp.float32).at[:H, 0].set(w1[0, :])
    b1c = jnp.zeros((H_pad, 1), jnp.float32).at[:H, 0].set(b1.reshape(-1))
    w2c = jnp.zeros((H_pad, 1), jnp.float32).at[:H, 0].set(w2[:, 0])
    b2s = b2.reshape((1,)).astype(jnp.float32)

    outT = pl.pallas_call(
        mlp_kernel,
        out_shape=jax.ShapeDtypeStruct((1, B_pad), jnp.float32),
        grid=(nb,),
        in_specs=[
            pl.BlockSpec((1, TB), lambda i: (0, i)),          # batch tile (streams)
            pl.BlockSpec((H_pad, 1), lambda i: (0, 0)),       # params: same block every step
            pl.BlockSpec((H_pad, 1), lambda i: (0, 0)),
            pl.BlockSpec((H_pad, 1), lambda i: (0, 0)),
            pl.BlockSpec(memory_space=pltpu.MemorySpace.SMEM),
        ],
        out_specs=pl.BlockSpec((1, TB), lambda i: (0, i)),
        compiler_params=pltpu.CompilerParams(
            dimension_semantics=("parallel",),
        ),
    )(xT, w1c, b1c, w2c, b2s)

    return outT[0, :B].reshape(B, 1)


def _ref_mlp(x, w1, b1, w2, b2):
    h = jnp.maximum(x @ w1 + b1, 0.0)
    return jax.nn.sigmoid(h @ w2 + b2) * 2.0


if __name__ == "__main__":
    in_size, hidden_size = 1, 100   # MLP defaults: in_size=1, hidden_size=100, num_layers=1

    key = jax.random.PRNGKey(0)
    kx, kw1, kb1, kw2, kb2, kx2 = jax.random.split(key, 6)

    # Deterministic param init (PyTorch Linear-style uniform bounds).
    bound1 = 1.0 / (in_size ** 0.5)
    w1 = jax.random.uniform(kw1, (in_size, hidden_size), jnp.float32, -bound1, bound1)
    b1 = jax.random.uniform(kb1, (1, hidden_size), jnp.float32, -bound1, bound1)
    bound2 = 1.0 / (hidden_size ** 0.5)
    w2 = jax.random.uniform(kw2, (hidden_size, 1), jnp.float32, -bound2, bound2)
    b2 = jax.random.uniform(kb2, (1, 1), jnp.float32, -bound2, bound2)

    # Small batch (single grid step).
    batch = 8
    x = jax.random.normal(kx, (batch, in_size), dtype=jnp.float32)
    out = mlp_forward(x, w1, b1, w2, b2)
    jax.block_until_ready(out)
    ref = _ref_mlp(x, w1, b1, w2, b2)
    assert out.shape == (batch, 1)
    assert jnp.allclose(out, ref, atol=1e-5), "mismatch vs reference (small batch)"

    # Larger batch (exercises the batch-tile grid + padding path).
    batch2 = 600
    x2 = jax.random.normal(kx2, (batch2, in_size), dtype=jnp.float32)
    out2 = mlp_forward(x2, w1, b1, w2, b2)
    jax.block_until_ready(out2)
    ref2 = _ref_mlp(x2, w1, b1, w2, b2)
    assert out2.shape == (batch2, 1)
    assert jnp.allclose(out2, ref2, atol=1e-5), "mismatch vs reference (large batch)"

    print("KERNEL_OK")
</pallas_src>

<mosaic_0001>
module attributes {stable_mosaic.version = 11 : i64} {
  func.func @mlp_kernel(%arg0: i32, %arg1: memref<1x128xf32, #tpu.memory_space<vmem>>, %arg2: memref<128x1xf32, #tpu.memory_space<vmem>>, %arg3: memref<128x1xf32, #tpu.memory_space<vmem>>, %arg4: memref<128x1xf32, #tpu.memory_space<vmem>>, %arg5: memref<1xf32, #tpu.memory_space<smem>>, %arg6: memref<1x128xf32, #tpu.memory_space<vmem>>) attributes {dimension_semantics = [#tpu.dimension_semantics<parallel>], iteration_bounds = array<i64: 1>, scalar_prefetch = 0 : i64, scratch_operands = 0 : i64, tpu.core_type = #tpu.core_type<tc>, window_params = [{transform_indices = @transform_0, window_bounds = array<i64: 1, 128>}, {pipeline_mode = #tpu.pipeline_mode<synchronous>, transform_indices = @transform_1, window_bounds = array<i64: 128, 1>}, {pipeline_mode = #tpu.pipeline_mode<synchronous>, transform_indices = @transform_2, window_bounds = array<i64: 128, 1>}, {pipeline_mode = #tpu.pipeline_mode<synchronous>, transform_indices = @transform_3, window_bounds = array<i64: 128, 1>}, {transform_indices = @transform_4, window_bounds = array<i64: 1>}, {transform_indices = @transform_5, window_bounds = array<i64: 1, 128>}]} {
    %c0 = arith.constant 0 : index
    %c0_0 = arith.constant 0 : index
    %0 = vector.load %arg1[%c0, %c0_0] : memref<1x128xf32, #tpu.memory_space<vmem>>, vector<1x128xf32>
    %c0_1 = arith.constant 0 : index
    %c0_2 = arith.constant 0 : index
    %1 = vector.load %arg2[%c0_1, %c0_2] : memref<128x1xf32, #tpu.memory_space<vmem>>, vector<128x1xf32>
    %2 = vector.broadcast %1 : vector<128x1xf32> to vector<128x128xf32>
    %3 = vector.broadcast %0 : vector<1x128xf32> to vector<128x128xf32>
    %4 = arith.mulf %2, %3 : vector<128x128xf32>
    %c0_3 = arith.constant 0 : index
    %c0_4 = arith.constant 0 : index
    %5 = vector.load %arg3[%c0_3, %c0_4] : memref<128x1xf32, #tpu.memory_space<vmem>>, vector<128x1xf32>
    %6 = vector.broadcast %5 : vector<128x1xf32> to vector<128x128xf32>
    %7 = arith.addf %4, %6 : vector<128x128xf32>
    %cst = arith.constant 0.000000e+00 : f32
    %8 = vector.broadcast %cst : f32 to vector<128x128xf32>
    %9 = arith.maximumf %7, %8 : vector<128x128xf32>
    %c0_5 = arith.constant 0 : index
    %c0_6 = arith.constant 0 : index
    %10 = vector.load %arg4[%c0_5, %c0_6] : memref<128x1xf32, #tpu.memory_space<vmem>>, vector<128x1xf32>
    %11 = vector.broadcast %10 : vector<128x1xf32> to vector<128x128xf32>
    %12 = arith.mulf %9, %11 : vector<128x128xf32>
    %cst_7 = arith.constant dense<0.000000e+00> : vector<128xf32>
    %13 = vector.multi_reduction <add>, %12, %cst_7 [0] : vector<128x128xf32> to vector<128xf32>
    %14 = vector.shape_cast %13 : vector<128xf32> to vector<1x128xf32>
    %c0_8 = arith.constant 0 : index
    %15 = memref.load %arg5[%c0_8] : memref<1xf32, #tpu.memory_space<smem>>
    %16 = vector.broadcast %15 : f32 to vector<1x128xf32>
    %17 = arith.addf %14, %16 : vector<1x128xf32>
    %18 = arith.negf %17 : vector<1x128xf32>
    %19 = math.exp %18 : vector<1x128xf32>
    %cst_9 = arith.constant 1.000000e+00 : f32
    %20 = vector.broadcast %cst_9 : f32 to vector<1x128xf32>
    %21 = arith.addf %20, %19 : vector<1x128xf32>
    %22 = arith.divf %20, %21 : vector<1x128xf32>
    %cst_10 = arith.constant 2.000000e+00 : f32
    %23 = vector.broadcast %cst_10 : f32 to vector<1x128xf32>
    %24 = arith.mulf %22, %23 : vector<1x128xf32>
    %c0_11 = arith.constant 0 : index
    %c0_12 = arith.constant 0 : index
    %25 = vector.load %arg6[%c0_11, %c0_12] : memref<1x128xf32, #tpu.memory_space<vmem>>, vector<1x128xf32>
    tpu.vector_store %arg6[%c0_11, %c0_12], %24 {strides = array<i32>} : memref<1x128xf32, #tpu.memory_space<vmem>>, vector<1x128xf32>,
    return
  }
  func.func @transform_0(%arg0: i32) -> (i32, i32) {
    %c0_i32 = arith.constant 0 : i32
    %c0_i32_0 = arith.constant 0 : i32
    return %c0_i32, %arg0 : i32, i32
  }
  func.func @transform_1(%arg0: i32) -> (i32, i32) {
    %c0_i32 = arith.constant 0 : i32
    %c0_i32_0 = arith.constant 0 : i32
    %c0_i32_1 = arith.constant 0 : i32
    return %c0_i32, %c0_i32_0 : i32, i32
  }
  func.func @transform_2(%arg0: i32) -> (i32, i32) {
    %c0_i32 = arith.constant 0 : i32
    %c0_i32_0 = arith.constant 0 : i32
    %c0_i32_1 = arith.constant 0 : i32
    return %c0_i32, %c0_i32_0 : i32, i32
  }
  func.func @transform_3(%arg0: i32) -> (i32, i32) {
    %c0_i32 = arith.constant 0 : i32
    %c0_i32_0 = arith.constant 0 : i32
    %c0_i32_1 = arith.constant 0 : i32
    return %c0_i32, %c0_i32_0 : i32, i32
  }
  func.func @transform_4(%arg0: i32) -> i32 {
    %c0_i32 = arith.constant 0 : i32
    %c0_i32_0 = arith.constant 0 : i32
    return %c0_i32 : i32
  }
  func.func @transform_5(%arg0: i32) -> (i32, i32) {
    %c0_i32 = arith.constant 0 : i32
    %c0_i32_0 = arith.constant 0 : i32
    return %c0_i32, %arg0 : i32, i32
  }
}

</mosaic_0001>

<bundles_post_ra>
// kernel: tpu_custom_call.1
= control target key start
LH: loop header
LB: loop body
LE: loop exit
PB: predicated region body
PF: predicated region fallthrough
CT: control target
= control target key end

     0   :  { %v461_v2 = vmov 0   ;;  %s679_s0 = inlined_call_operand.vmem [shape: f32[1,128], index: 0, kind: input, shape index: {}]   ;;  %s680_s1 = inlined_call_operand.vmem [shape: f32[128,1], index: 1, kind: input, shape index: {}]   ;;  %s681_s2 = inlined_call_operand.vmem [shape: f32[128,1], index: 2, kind: input, shape index: {}]   ;;  %s682_s3 = inlined_call_operand.vmem [shape: f32[128,1], index: 3, kind: input, shape index: {}]   ;;  %s683_s4 = inlined_call_operand.<no memory space> [shape: f32[1], index: 4, kind: input, shape index: {}]   ;;  %s684_s5 = inlined_call_operand.hbm [shape: f32[1,128], index: 5, kind: output, shape index: {}]  }
   0x1   :  { %v25_v0 = vld [vmem:[%s680_s1 + $0x10] sm:$0xff]  ;;  %v23_v1 = vld [vmem:[%s680_s1] sm:$0xff]  ;;  %432 = vset.pattern.permute.xlu1 %v461_v2  ;;  %431 = vset.pattern.permute.xlu0 %v461_v2  ;;  %v26_v3 = vld [vmem:[%s680_s1 + $0x18] sm:$0xff] }
   0x2   :  { %51 = vperm.xlu1 %432, %v25_v0   ;;  %41 = vperm.xlu0 %431, %v23_v1   ;;  %v24_v4 = vld [vmem:[%s680_s1 + $0x8] sm:$0xff]  ;;  %v27_v6 = vld [vmem:[%s680_s1 + $0x20] sm:$0xff]  ;;  %v30_v7 = vld [vmem:[%s680_s1 + $0x38] sm:$0xff] }
   0x3   :  { %v28_v5 = vld [vmem:[%s680_s1 + $0x28] sm:$0xff]  ;;  %v29_v8 = vld [vmem:[%s680_s1 + $0x30] sm:$0xff]  ;;  %v31_v10 = vld [vmem:[%s680_s1 + $0x40] sm:$0xff] }
   0x4   :  { %v32_v9 = vld [vmem:[%s680_s1 + $0x48] sm:$0xff] }
   0x6   :  { %56 = vperm.xlu1 %432, %v26_v3   ;;  %46 = vperm.xlu0 %431, %v24_v4  }
   0xa   :  { %66 = vperm.xlu1 %432, %v28_v5   ;;  %61 = vperm.xlu0 %431, %v27_v6  }
   0xe   :  { %76 = vperm.xlu1 %432, %v30_v7   ;;  %71 = vperm.xlu0 %431, %v29_v8  }
   0xf   :  { %11 = vsyncpa [#allocation4], 0  ;;  %v34_v11 = vld [vmem:[%s680_s1 + $0x58] sm:$0xff]  ;;  %v33_v12 = vld [vmem:[%s680_s1 + $0x50] sm:$0xff]  ;;  %s462_s14 = smov [#allocation3]  }
  0x10   :  { %v142_v13 = vld [vmem:[%s681_s2 + $0x8] sm:$0xff]  ;;  %v141_v14 = vld [vmem:[%s681_s2] sm:$0xff]  ;;  %v144_v15 = vld [vmem:[%s681_s2 + $0x18] sm:$0xff]  ;;  %s419_s15 = sshll.u32 %s462_s14, 4  ;;  %s420_s15 = int_to_ptr.vmem [resolvable:$true] %s419_s15 }
  0x11   :  { %v143_v16 = vld [vmem:[%s681_s2 + $0x10] sm:$0xff]  ;;  %v270_v17 = vld [vmem:[%s682_s3 + $0x8] sm:$0xff]  ;;  %v269_v18 = vld [vmem:[%s682_s3] sm:$0xff]  ;;  %s437_s16 = scalar_lea.vmem %s420_s15, 16  ;;  %s441_s17 = scalar_lea.vmem %s420_s15, 32 }
  0x12   :  { %86 = vperm.xlu1 %432, %v32_v9   ;;  %81 = vperm.xlu0 %431, %v31_v10   ;;  %v271_v19 = vld [vmem:[%s682_s3 + $0x10] sm:$0xff]  ;;  %v145_v20 = vld [vmem:[%s681_s2 + $0x20] sm:$0xff]  ;;  %v272_v21 = vld [vmem:[%s682_s3 + $0x18] sm:$0xff]  ;;  %p438_p0 = scmp.ne.s32.totalorder %s420_s15, %s437_s16  ;;  %p442_p1 = scmp.lt.s32.totalorder %s420_s15, %s420_s15 }
  0x13   :  { %v146_v22 = vld [vmem:[%s681_s2 + $0x28] sm:$0xff]  ;;  %v273_v23 = vld [vmem:[%s682_s3 + $0x20] sm:$0xff]  ;;  %v147_v24 = vld [vmem:[%s681_s2 + $0x30] sm:$0xff]  ;;  %p443_p2 = scmp.lt.s32.totalorder %s441_s17, %s437_s16 }
  0x14   :  { %v274_v25 = vld [vmem:[%s682_s3 + $0x28] sm:$0xff]  ;;  %v148_v26 = vld [vmem:[%s681_s2 + $0x38] sm:$0xff]  ;;  %v275_v27 = vld [vmem:[%s682_s3 + $0x30] sm:$0xff] }
  0x15   :  { %v149_v28 = vld [vmem:[%s681_s2 + $0x40] sm:$0xff]  ;;  %v276_v29 = vld [vmem:[%s682_s3 + $0x38] sm:$0xff]  ;;  %v150_v30 = vld [vmem:[%s681_s2 + $0x48] sm:$0xff]  ;;  %p444_p3 = por %p443_p2, %p442_p1 }
  0x16   :  { %96 = vperm.xlu1 %432, %v34_v11   ;;  %91 = vperm.xlu0 %431, %v33_v12   ;;  %v277_v31 = vld [vmem:[%s682_s3 + $0x40] sm:$0xff]  ;;  %v151_v32 = vld [vmem:[%s681_s2 + $0x50] sm:$0xff]  ;;  %v152_v33 = vld [vmem:[%s681_s2 + $0x58] sm:$0xff] }
  0x17   :  { %v35_v34 = vld [vmem:[%s680_s1 + $0x60] sm:$0xff]  ;;  %v36_v35 = vld [vmem:[%s680_s1 + $0x68] sm:$0xff]  ;;  %v279_v37 = vld [vmem:[%s682_s3 + $0x50] sm:$0xff]  ;;  %p445_p4 = pnand %p444_p3, %p438_p0 }
  0x18   :  { %v278_v36 = vld [vmem:[%s682_s3 + $0x48] sm:$0xff]  ;;  %v153_v38 = vld [vmem:[%s681_s2 + $0x60] sm:$0xff]  ;;  %v37_v40 = vld [vmem:[%s680_s1 + $0x70] sm:$0xff] }
  0x19   :  { %v154_v39 = vld [vmem:[%s681_s2 + $0x68] sm:$0xff]  ;;  %v38_v41 = vld [vmem:[%s680_s1 + $0x78] sm:$0xff]  ;;  %v281_v43 = vld [vmem:[%s682_s3 + $0x60] sm:$0xff] }
  0x1a   :  { %164 = vperm.xlu1 %432, %v142_v13   ;;  %159 = vperm.xlu0 %431, %v141_v14   ;;  %v280_v42 = vld [vmem:[%s682_s3 + $0x58] sm:$0xff]  ;;  %v155_v44 = vld [vmem:[%s681_s2 + $0x70] sm:$0xff]  ;;  %v282_v45 = vld [vmem:[%s682_s3 + $0x68] sm:$0xff] }
  0x1b   :  { %v156_v46 = vld [vmem:[%s681_s2 + $0x78] sm:$0xff]  ;;  %v283_v48 = vld [vmem:[%s682_s3 + $0x70] sm:$0xff]  ;;  %v644_v13 = vld [vmem:[%s679_s0] ss:$0 sm:$0xff] }
  0x1c   :  { %v284_v47 = vld [vmem:[%s682_s3 + $0x78] sm:$0xff] }
  0x1e   :  { %174 = vperm.xlu1 %432, %v144_v15   ;;  %169 = vperm.xlu0 %431, %v143_v16  }
  0x22   :  { %292 = vperm.xlu1 %432, %v270_v17   ;;  %287 = vperm.xlu0 %431, %v269_v18  }
  0x26   :  { %297 = vperm.xlu1 %432, %v271_v19   ;;  %179 = vperm.xlu0 %431, %v145_v20  }
  0x2a   :  { %302 = vperm.xlu1 %432, %v272_v21   ;;  %184 = vperm.xlu0 %431, %v146_v22  }
  0x2e   :  { %307 = vperm.xlu1 %432, %v273_v23   ;;  %189 = vperm.xlu0 %431, %v147_v24  }
  0x32   :  { %312 = vperm.xlu1 %432, %v274_v25   ;;  %194 = vperm.xlu0 %431, %v148_v26  }
  0x36   :  { %317 = vperm.xlu1 %432, %v275_v27   ;;  %199 = vperm.xlu0 %431, %v149_v28  }
  0x3a   :  { %322 = vperm.xlu1 %432, %v276_v29   ;;  %204 = vperm.xlu0 %431, %v150_v30  }
  0x3e   :  { %327 = vperm.xlu1 %432, %v277_v31   ;;  %209 = vperm.xlu0 %431, %v151_v32  }
  0x42   :  { %214 = vperm.xlu1 %432, %v152_v33   ;;  %101 = vperm.xlu0 %431, %v35_v34  }
  0x46   :  { %106 = vperm.xlu1 %432, %v36_v35   ;;  %332 = vperm.xlu0 %431, %v278_v36  }
  0x4a   :  { %337 = vperm.xlu1 %432, %v279_v37   ;;  %219 = vperm.xlu0 %431, %v153_v38  }
  0x4e   :  { %224 = vperm.xlu1 %432, %v154_v39   ;;  %111 = vperm.xlu0 %431, %v37_v40  }
  0x52   :  { %116 = vperm.xlu1 %432, %v38_v41   ;;  %342 = vperm.xlu0 %431, %v280_v42  }
  0x56   :  { %347 = vperm.xlu1 %432, %v281_v43   ;;  %229 = vperm.xlu0 %431, %v155_v44  }
  0x5a   :  { %352 = vperm.xlu1 %432, %v282_v45   ;;  %234 = vperm.xlu0 %431, %v156_v46  }
  0x5e   :  { %362 = vperm.xlu1 %432, %v284_v47   ;;  %357 = vperm.xlu0 %431, %v283_v48  }
  0x81   :  { %v52_v49 = vpop.permute.xlu1 %51  ;;  %v42_v50 = vpop.permute.xlu0 %41 }
  0x82   :  { %v125_v14 = vmul.f32 %v644_v13, %v42_v50  ;;  %v127_v18 = vmul.f32 %v644_v13, %v52_v49 }
  0x85   :  { %v57_v51 = vpop.permute.xlu1 %56  ;;  %v47_v52 = vpop.permute.xlu0 %46 }
  0x86   :  { %v126_v15 = vmul.f32 %v644_v13, %v47_v52  ;;  %v128_v21 = vmul.f32 %v644_v13, %v57_v51 }
  0x89   :  { %v67_v53 = vpop.permute.xlu1 %66  ;;  %v62_v54 = vpop.permute.xlu0 %61 }
  0x8a   :  { %v129_v25 = vmul.f32 %v644_v13, %v62_v54  ;;  %v130_v29 = vmul.f32 %v644_v13, %v67_v53 }
  0x8d   :  { %v77_v55 = vpop.permute.xlu1 %76  ;;  %v72_v56 = vpop.permute.xlu0 %71 }
  0x8e   :  { %v131_v36 = vmul.f32 %v644_v13, %v72_v56  ;;  %v132_v40 = vmul.f32 %v644_v13, %v77_v55 }
  0x91   :  { %v87_v57 = vpop.permute.xlu1 %86  ;;  %v82_v58 = vpop.permute.xlu0 %81 }
  0x92   :  { %v133_v47 = vmul.f32 %v644_v13, %v82_v58  ;;  %v134_v52 = vmul.f32 %v644_v13, %v87_v57 }
  0x95   :  { %v637_v59 = vpop.permute.xlu1 %96  ;;  %v639_v60 = vpop.permute.xlu0 %91 }
  0x96   :  { %v136_v57 = vmul.f32 %v644_v13, %v637_v59 }
  0x99   :  { %v165_v61 = vpop.permute.xlu1 %164  ;;  %v160_v62 = vpop.permute.xlu0 %159 }
  0x9a   :  { %v238_v19 = vadd.f32 %v165_v61, %v126_v15  ;;  %v237_v20 = vadd.f32 %v160_v62, %v125_v14 }
  0x9c   :  { %v254_v26 = vmax.f32 %v238_v19, 0.0  ;;  %v253_v27 = vmax.f32 %v237_v20, 0.0 }
  0x9d   :  { %v175_v63 = vpop.permute.xlu1 %174  ;;  %v170_v0 = vpop.permute.xlu0 %169 }
  0x9e   :  { %v239_v22 = vadd.f32 %v170_v0, %v127_v18  ;;  %v240_v28 = vadd.f32 %v175_v63, %v128_v21  ;;  %v135_v63 = vmul.f32 %v644_v13, %v639_v60 }
  0xa0   :  { %v255_v30 = vmax.f32 %v239_v22, 0.0  ;;  %v256_v37 = vmax.f32 %v240_v28, 0.0 }
  0xa1   :  { %v293_v1 = vpop.permute.xlu1 %292  ;;  %v288_v2 = vpop.permute.xlu0 %287 }
  0xa2   :  { %v366_v31 = vmul.f32 %v293_v1, %v254_v26  ;;  %v365_v32 = vmul.f32 %v288_v2, %v253_v27 }
  0xa4   :  { %v381_v41 = vadd.f32 %v366_v31, %v365_v32 }
  0xa5   :  { %v298_v3 = vpop.permute.xlu1 %297  ;;  %v180_v4 = vpop.permute.xlu0 %179 }
  0xa6   :  { %v241_v33 = vadd.f32 %v180_v4, %v129_v25  ;;  %v367_v38 = vmul.f32 %v298_v3, %v255_v30 }
  0xa8   :  { %v257_v42 = vmax.f32 %v241_v33, 0.0  ;;  %v382_v48 = vadd.f32 %v381_v41, %v367_v38 }
  0xa9   :  { %v303_v5 = vpop.permute.xlu1 %302  ;;  %v185_v6 = vpop.permute.xlu0 %184 }
  0xaa   :  { %v242_v39 = vadd.f32 %v185_v6, %v130_v29  ;;  %v368_v43 = vmul.f32 %v303_v5, %v256_v37 }
  0xac   :  { %v258_v49 = vmax.f32 %v242_v39, 0.0  ;;  %v383_v53 = vadd.f32 %v382_v48, %v368_v43 }
  0xad   :  { %v308_v7 = vpop.permute.xlu1 %307  ;;  %v190_v8 = vpop.permute.xlu0 %189 }
  0xae   :  { %v243_v44 = vadd.f32 %v190_v8, %v131_v36  ;;  %v369_v50 = vmul.f32 %v308_v7, %v257_v42 }
  0xb0   :  { %v259_v54 = vmax.f32 %v243_v44, 0.0  ;;  %v384_v0 = vadd.f32 %v383_v53, %v369_v50 }
  0xb1   :  { %v313_v9 = vpop.permute.xlu1 %312  ;;  %v195_v10 = vpop.permute.xlu0 %194 }
  0xb2   :  { %v244_v51 = vadd.f32 %v195_v10, %v132_v40  ;;  %v370_v56 = vmul.f32 %v313_v9, %v258_v49 }
  0xb4   :  { %v260_v1 = vmax.f32 %v244_v51, 0.0  ;;  %v385_v58 = vadd.f32 %v384_v0, %v370_v56 }
  0xb5   :  { %v318_v11 = vpop.permute.xlu1 %317  ;;  %v200_v12 = vpop.permute.xlu0 %199 }
  0xb6   :  { %v245_v61 = vadd.f32 %v200_v12, %v133_v47  ;;  %v371_v2 = vmul.f32 %v318_v11, %v259_v54  ;;  %v403_v54 = vstv %s683_s4 }
  0xb8   :  { %v261_v4 = vmax.f32 %v245_v61, 0.0  ;;  %v386_v9 = vadd.f32 %v385_v58, %v371_v2 }
  0xb9   :  { %v323_v16 = vpop.permute.xlu1 %322  ;;  %v205_v17 = vpop.permute.xlu0 %204 }
  0xba   :  { %v246_v3 = vadd.f32 %v205_v17, %v134_v52  ;;  %v372_v5 = vmul.f32 %v323_v16, %v260_v1 }
  0xbc   :  { %v262_v10 = vmax.f32 %v246_v3, 0.0  ;;  %v387_v60 = vadd.f32 %v386_v9, %v372_v5 }
  0xbd   :  { %v328_v23 = vpop.permute.xlu1 %327  ;;  %v210_v24 = vpop.permute.xlu0 %209 }
  0xbe   :  { %v247_v6 = vadd.f32 %v210_v24, %v135_v63  ;;  %v373_v12 = vmul.f32 %v328_v23, %v261_v4 }
  0xc0   :  { %v263_v18 = vmax.f32 %v247_v6, 0.0  ;;  %v388_v21 = vadd.f32 %v387_v60, %v373_v12 }
  0xc1   :  { %v215_v34 = vpop.permute.xlu1 %214  ;;  %v102_v35 = vpop.permute.xlu0 %101 }
  0xc2   :  { %v248_v14 = vadd.f32 %v215_v34, %v136_v57  ;;  %v137_v15 = vmul.f32 %v644_v13, %v102_v35 }
  0xc4   :  { %v264_v24 = vmax.f32 %v248_v14, 0.0 }
  0xc5   :  { %v107_v45 = vpop.permute.xlu1 %106  ;;  %v333_v46 = vpop.permute.xlu0 %332 }
  0xc6   :  { %v374_v19 = vmul.f32 %v333_v46, %v262_v10  ;;  %v138_v20 = vmul.f32 %v644_v13, %v107_v45 }
  0xc8   :  { %v389_v26 = vadd.f32 %v388_v21, %v374_v19 }
  0xc9   :  { %v338_v62 = vpop.permute.xlu1 %337  ;;  %v220_v55 = vpop.permute.xlu0 %219 }
  0xca   :  { %v249_v16 = vadd.f32 %v220_v55, %v137_v15  ;;  %v375_v22 = vmul.f32 %v338_v62, %v263_v18 }
  0xcc   :  { %v265_v28 = vmax.f32 %v249_v16, 0.0  ;;  %v390_v30 = vadd.f32 %v389_v26, %v375_v22 }
  0xcd   :  { %v225_v7 = vpop.permute.xlu1 %224  ;;  %v112_v8 = vpop.permute.xlu0 %111 }
  0xce   :  { %v250_v25 = vadd.f32 %v225_v7, %v138_v20  ;;  %v139_v23 = vmul.f32 %v644_v13, %v112_v8 }
  0xd0   :  { %v266_v31 = vmax.f32 %v250_v25, 0.0 }
  0xd1   :  { %v117_v11 = vpop.permute.xlu1 %116  ;;  %v343_v17 = vpop.permute.xlu0 %342 }
  0xd2   :  { %v376_v29 = vmul.f32 %v343_v17, %v264_v24  ;;  %v140_v32 = vmul.f32 %v644_v13, %v117_v11 }
  0xd4   :  { %v391_v37 = vadd.f32 %v390_v30, %v376_v29 }
  0xd5   :  { %v348_v59 = vpop.permute.xlu1 %347  ;;  %v230_v27 = vpop.permute.xlu0 %229 }
  0xd6   :  { %v377_v33 = vmul.f32 %v348_v59, %v265_v28  ;;  %v251_v34 = vadd.f32 %v230_v27, %v139_v23 }
  0xd8   :  { %v392_v40 = vadd.f32 %v391_v37, %v377_v33  ;;  %v267_v41 = vmax.f32 %v251_v34, 0.0 }
  0xd9   :  { %v353_v35 = vpop.permute.xlu1 %352  ;;  %v235_v36 = vpop.permute.xlu0 %234 }
  0xda   :  { %v378_v38 = vmul.f32 %v353_v35, %v266_v31  ;;  %v252_v39 = vadd.f32 %v235_v36, %v140_v32 }
  0xdc   :  { %v268_v42 = vmax.f32 %v252_v39, 0.0  ;;  %v393_v45 = vadd.f32 %v392_v40, %v378_v38 }
  0xdd   :  { %v363_v43 = vpop.permute.xlu1 %362  ;;  %v358_v44 = vpop.permute.xlu0 %357 }
  0xde   :  { %v379_v46 = vmul.f32 %v358_v44, %v267_v41  ;;  %v380_v47 = vmul.f32 %v363_v43, %v268_v42 }
  0xe0   :  { %v394_v48 = vadd.f32 %v393_v45, %v379_v46 }
  0xe2   :  { %v395_v49 = vadd.f32 %v394_v48, %v380_v47 }
  0xe4   :  { %v396_v50 = vrot.slane %v395_v49, 4 }
  0xe6   :  { %v397_v51 = vadd.f32 %v396_v50, %v395_v49 }
  0xe8   :  { %v398_v13 = vrot.slane %v397_v51, 2 }
  0xea   :  { %v399_v52 = vadd.f32 %v398_v13, %v397_v51 }
  0xec   :  { %v400_v53 = vrot.slane %v399_v52, 1 }
  0xee   :  { %v401_v56 = vadd.f32 %v400_v53, %v399_v52 }
  0xf0   :  { %v404_v61 = vadd.f32 %v403_v54, %v401_v56 }
  0xf2   :  { %v428_v62 = vmul.f32 -1.442695, %v404_v61 }
  0xf4   :  { %433 = vpow2.f32 %v428_v62 }
  0xfe   :  { %v434_v55 = vpop.eup %433 }
  0xff   :  { %v408_v63 = vadd.f32 1.0, %v434_v55 }
 0x101   :  { %435 = vrcp.f32 %v408_v63 }
 0x10b   :  { %v436_v0 = vpop.eup %435 }
 0x10c   :  { %v411_v1 = vmul.f32 2.0, %v436_v0 }
 0x10e   :  { %412 = vst [vmem:[#allocation3] sm:$0x1] %v411_v1 }
 0x10f   :  { %448 = shalt.err (!%p445_p4)
}
 0x110   :  { %s449_s19 = scalar_lea.hbm %s684_s5, 16 }
 0x111   :  { %p450_p5 = scmp.ne.s32.totalorder %s684_s5, %s449_s19  ;;  %p453_p6 = scmp.lt.u32.totalorder %s449_s19, %s684_s5 }
 0x113   :  { %p455_p7 = pnand %p453_p6, %p450_p5 }
 0x115   :  { %458 = shalt.err (!%p455_p7)
}
 0x116   :  { %422 = dma.vmem_to_hbm [thread:$0]  %s420_s15, 16, %s684_s5, [#allocation4]  }
 0x117   :  { %459 = dma.done.wait [#allocation4], 16  }
 0x118   :  { %460 = vsyncadd [#allocation4], 4294967280 }
 0x119   :  { %426 = vsyncpa [#allocation4], 1 }

</bundles_post_ra>
